<compile_context>
chip_gen: v6e
topology: v6e:2x2x1
jax: 0.10.0
libtpu: 0.0.40
codegen_flags: <defaults>
</compile_context>

<pallas_src>
import functools

import jax
import jax.numpy as jnp
from jax.experimental import pallas as pl
from jax.experimental.pallas import tpu as pltpu


def _value_estimator_kernel(h_ref, q_ref, wp_ref, bp_ref, wc_ref, w1_ref,
                            b1_ref, w2_ref, b2_ref, bc_ref, out_ref,
                            *, flatten_ok):
    """One batch tile per grid step; everything for the tile is VMEM-resident.

    h_ref : [Bt, S, H]   hidden states (batch tile)
    q_ref : [1, H]       attention_query (row)
    wp_ref: [H, H4]      pattern_dense.W.T     bp_ref: [1, H4]
    wc_ref: [1, H4]      pattern_classifier.W (row)
    w1_ref: [H, H2]      dense1.W.T            b1_ref: [1, H2]
    w2_ref: [H2, 1]      dense2.W.T
    b2_ref: [1] SMEM     dense2 bias           bc_ref: [1] SMEM classifier bias
    out_ref: [Bt, 1]
    """
    Bt, S, H = h_ref.shape
    H4 = wp_ref.shape[1]

    h3 = h_ref[...]                                         # [Bt,S,H] compute dtype
    h3f = h3.astype(jnp.float32)

    # ---- attention scores: VPU multiply + lane reduce (no skinny N=1 MXU) ----
    # keepdims keeps S on the sublane axis -> no relayout for the softmax.
    scores = jnp.sum((h3 * q_ref[...]).astype(jnp.float32),
                     axis=-1, keepdims=True)                # [Bt,S,1] f32

    # ---- stable softmax over S (sublane-axis reductions) ----
    m = jnp.max(scores, axis=1, keepdims=True)              # [Bt,1,1]
    e = jnp.exp(scores - m)                                 # [Bt,S,1]
    l = jnp.sum(e, axis=1, keepdims=True)                   # [Bt,1,1]
    inv_l = 1.0 / l                                         # exact; tiny vector

    # ---- softmax-weighted pooling: per-row scale + sublane sum (VPU/XLU) ----
    pooled = jnp.sum(h3f * e, axis=1) * inv_l[:, 0, :]      # [Bt,H] f32

    # ---- pattern features: the one real MXU matmul ----
    if flatten_ok:
        # S is a multiple of the sublane count -> flatten is layout-preserving,
        # one big-M MXU pass over all Bt*S rows.
        zf = jnp.dot(h3.reshape(Bt * S, H), wp_ref[...],
                     preferred_element_type=jnp.float32)    # [Bt*S,H4]
        z = zf.reshape(Bt, S, H4)
    else:
        wpb = jnp.broadcast_to(wp_ref[...], (Bt, H, H4))
        z = jnp.einsum('bsh,bhf->bsf', h3, wpb,
                       preferred_element_type=jnp.float32)  # [Bt,S,H4]
    z = jnp.maximum(z + bp_ref[...], 0.0)                   # [Bt,S,H4] f32

    # ---- pattern classifier: broadcast-mult + lane reduce (no N=1 MXU) ----
    logits = jnp.sum(z * wc_ref[...], axis=-1, keepdims=True) + bc_ref[0]  # [Bt,S,1]
    pattern = jnp.mean(jax.nn.sigmoid(logits), axis=1)      # [Bt,1]

    # ---- value head on the pooled vectors ----
    y = jnp.dot(pooled.astype(w1_ref.dtype), w1_ref[...],
                preferred_element_type=jnp.float32) + b1_ref[...]          # [Bt,H2]
    y = jnp.maximum(y, 0.0)
    base = jax.nn.sigmoid(
        jnp.dot(y, w2_ref[...], preferred_element_type=jnp.float32)
        + b2_ref[0])                                        # [Bt,1]

    out_ref[...] = (0.7 * base + 0.3 * pattern).astype(out_ref.dtype)


def prepare_params(params, compute_dtype=jnp.float32):
    """One-time weight prep (hoisted out of the per-iteration forward call).

    MXU-facing weights go to `compute_dtype` (bf16 recommended on v6e/v7x);
    biases and the VPU-side row vectors stay f32.
    """
    f32 = jnp.float32
    H = params["q"].shape[0]
    return {
        "q":  params["q"].reshape(1, H).astype(compute_dtype),   # attention_query row
        "wp": params["wp"].astype(compute_dtype),                # [H, H4]
        "bp": params["bp"].reshape(1, -1).astype(f32),           # [1, H4]
        "wc": params["wc"].reshape(1, -1).astype(f32),           # [1, H4] row
        "w1": params["w1"].astype(compute_dtype),                # [H, H2]
        "b1": params["b1"].reshape(1, -1).astype(f32),           # [1, H2]
        "w2": params["w2"].astype(f32),                          # [H2, 1]
        "b2": params["b2"].reshape(1).astype(f32),               # SMEM scalar
        "bc": params["bc"].reshape(1).astype(f32),               # SMEM scalar
    }


def _choose_batch_tile(B, S, H, in_dtype, budget_bytes=40 * 1024 * 1024):
    """Largest batch tile that fits the per-generation VMEM budget."""
    H4, H2 = H // 4, H // 2
    in_bytes = jnp.dtype(in_dtype).itemsize
    weight_bytes = 4 * (H * H4 + H * H2 + H + 2 * H4 + 2 * H2 + 2)
    # per batch row of a block: double-buffered input + f32 temporaries
    per_row = 2 * S * H * in_bytes + 4 * S * (H + H4 + 4)
    bt = max(1, int((budget_bytes - weight_bytes) // max(per_row, 1)))
    if bt >= B:
        return B
    bt = max(8, (bt // 8) * 8)   # keep the (Bt, 1) out-block sublane-aligned
    return min(bt, B)


def improved_value_estimator(hidden_states, prep, *, batch_tile=None,
                             vmem_limit_bytes=48 * 1024 * 1024):
    """Gridded pallas_call over the batch axis.

    hidden_states: [B, S, H]; prep: output of prepare_params (call once).
    """
    B, S, H = hidden_states.shape
    H2, H4 = H // 2, H // 4

    # sublane granularity of the input dtype (f32:8, bf16:16, 8-bit:32)
    sub = {4: 8, 2: 16, 1: 32}[jnp.dtype(hidden_states.dtype).itemsize]
    flatten_ok = (S % sub == 0)

    Bt = batch_tile if batch_tile is not None else _choose_batch_tile(
        B, S, H, hidden_states.dtype)
    grid = (pl.cdiv(B, Bt),)

    kernel = functools.partial(_value_estimator_kernel, flatten_ok=flatten_ok)

    def _w(shape):
        # weights: constant index_map -> stay VMEM-resident across grid steps
        return pl.BlockSpec(shape, lambda i, _s=shape: tuple(0 for _ in _s))

    smem = pl.BlockSpec(memory_space=pltpu.MemorySpace.SMEM)

    itemsize = jnp.dtype(hidden_states.dtype).itemsize
    wsize = jnp.dtype(prep["wp"].dtype).itemsize
    flops = int(2 * B * S * H * H4          # pattern matmul
                + 2 * B * S * H             # attention scores
                + 3 * B * S * H             # weighted pooling
                + 2 * B * S * H4            # pattern classifier reduce
                + 2 * B * H * H2 + 2 * B * H2)
    bytes_accessed = int(B * S * H * itemsize
                         + (H * H4 + H * H2 + H) * wsize
                         + (2 * H4 + 2 * H2 + 2) * 4
                         + B * 4)
    cost = pl.CostEstimate(flops=flops,
                           transcendentals=int(2 * B * S + B),
                           bytes_accessed=bytes_accessed)

    return pl.pallas_call(
        kernel,
        out_shape=jax.ShapeDtypeStruct((B, 1), jnp.float32),
        grid=grid,
        in_specs=[
            pl.BlockSpec((Bt, S, H), lambda i: (i, 0, 0)),   # hidden states (tiled)
            _w((1, H)),        # q
            _w((H, H4)),       # wp
            _w((1, H4)),       # bp
            _w((1, H4)),       # wc
            _w((H, H2)),       # w1
            _w((1, H2)),       # b1
            _w((H2, 1)),       # w2
            smem,              # b2 (scalar)
            smem,              # bc (scalar)
        ],
        out_specs=pl.BlockSpec((Bt, 1), lambda i: (i, 0)),
        compiler_params=pltpu.CompilerParams(
            dimension_semantics=("parallel",),
            vmem_limit_bytes=vmem_limit_bytes),
        cost_estimate=cost,
    )(hidden_states, prep["q"], prep["wp"], prep["bp"], prep["wc"],
      prep["w1"], prep["b1"], prep["w2"], prep["b2"], prep["bc"])


def reference_value_estimator(hidden_states, params):
    """Pure-JAX mirror of the PyTorch forward() for correctness checking."""
    h = hidden_states.astype(jnp.float32)
    q = params["q"][:, 0]                                              # [H]
    scores = jnp.einsum("bsh,h->bs", h, q)[..., None]                  # [B,S,1]
    weights = jax.nn.softmax(scores, axis=1)                           # [B,S,1]
    pooled = jnp.sum(weights * h, axis=1)                              # [B,H]

    z = jnp.maximum(jnp.einsum("bsh,hf->bsf", h, params["wp"]) + params["bp"], 0.0)
    p = jax.nn.sigmoid(jnp.einsum("bsf,fo->bso", z, params["wc"]) + params["bc"])
    pattern = jnp.mean(p, axis=1)                                      # [B,1]

    y = jnp.maximum(pooled @ params["w1"] + params["b1"], 0.0)
    base = jax.nn.sigmoid(y @ params["w2"] + params["b2"])             # [B,1]
    return 0.7 * base + 0.3 * pattern


def make_params(key, hidden_size):
    """Deterministic synthetic parameters (same shapes as the PyTorch module)."""
    h, h2, h4 = hidden_size, hidden_size // 2, hidden_size // 4
    ks = jax.random.split(key, 9)
    s = 0.1
    return {
        "q":  jax.random.normal(ks[0], (h, 1), jnp.float32),           # attention_query
        "w1": s * jax.random.normal(ks[1], (h, h2), jnp.float32),      # dense1.weight.T
        "b1": s * jax.random.normal(ks[2], (1, h2), jnp.float32),
        "w2": s * jax.random.normal(ks[3], (h2, 1), jnp.float32),      # dense2.weight.T
        "b2": s * jax.random.normal(ks[4], (1, 1), jnp.float32),
        "wp": s * jax.random.normal(ks[5], (h, h4), jnp.float32),      # pattern_dense.weight.T
        "bp": s * jax.random.normal(ks[6], (1, h4), jnp.float32),
        "wc": s * jax.random.normal(ks[7], (h4, 1), jnp.float32),      # pattern_classifier.weight.T
        "bc": s * jax.random.normal(ks[8], (1, 1), jnp.float32),
    }


# TODO(synk): value_history / prev_values / convergence_counter bookkeeping and
# check_convergence / should_continue_iteration are host-side Python state,
# not tensor compute, so they are intentionally not part of the kernel.

if __name__ == "__main__":
    B, S, H = 2, 8, 32   # batch=2, seq=8, hidden=32
    key = jax.random.PRNGKey(0)
    k_x, k_p = jax.random.split(key)
    hidden_states = jax.random.normal(k_x, (B, S, H), jnp.float32)
    params = make_params(k_p, H)

    # Hoisted, one-time weight prep (reused across convergence-loop iterations).
    prepared = prepare_params(params, compute_dtype=jnp.float32)

    out = improved_value_estimator(hidden_states, prepared)
    out = jax.block_until_ready(out)

    ref = reference_value_estimator(hidden_states, params)
    assert out.shape == (B, 1), out.shape
    assert jnp.allclose(out, ref, atol=1e-3, rtol=1e-3), (out, ref)

    print("KERNEL_OK")
</pallas_src>

<mosaic_0001>
module attributes {stable_mosaic.version = 11 : i64} {
  func.func @_value_estimator_kernel(%arg0: i32, %arg1: memref<2x8x32xf32, #tpu.memory_space<vmem>>, %arg2: memref<1x32xf32, #tpu.memory_space<vmem>>, %arg3: memref<32x8xf32, #tpu.memory_space<vmem>>, %arg4: memref<1x8xf32, #tpu.memory_space<vmem>>, %arg5: memref<1x8xf32, #tpu.memory_space<vmem>>, %arg6: memref<32x16xf32, #tpu.memory_space<vmem>>, %arg7: memref<1x16xf32, #tpu.memory_space<vmem>>, %arg8: memref<16x1xf32, #tpu.memory_space<vmem>>, %arg9: memref<1xf32, #tpu.memory_space<smem>>, %arg10: memref<1xf32, #tpu.memory_space<smem>>, %arg11: memref<2x1xf32, #tpu.memory_space<vmem>>) attributes {dimension_semantics = [#tpu.dimension_semantics<parallel>], iteration_bounds = array<i64: 1>, scalar_prefetch = 0 : i64, scratch_operands = 0 : i64, tpu.core_type = #tpu.core_type<tc>, window_params = [{transform_indices = @transform_0, window_bounds = array<i64: 2, 8, 32>}, {pipeline_mode = #tpu.pipeline_mode<synchronous>, transform_indices = @transform_1, window_bounds = array<i64: 1, 32>}, {pipeline_mode = #tpu.pipeline_mode<synchronous>, transform_indices = @transform_2, window_bounds = array<i64: 32, 8>}, {pipeline_mode = #tpu.pipeline_mode<synchronous>, transform_indices = @transform_3, window_bounds = array<i64: 1, 8>}, {pipeline_mode = #tpu.pipeline_mode<synchronous>, transform_indices = @transform_4, window_bounds = array<i64: 1, 8>}, {pipeline_mode = #tpu.pipeline_mode<synchronous>, transform_indices = @transform_5, window_bounds = array<i64: 32, 16>}, {pipeline_mode = #tpu.pipeline_mode<synchronous>, transform_indices = @transform_6, window_bounds = array<i64: 1, 16>}, {pipeline_mode = #tpu.pipeline_mode<synchronous>, transform_indices = @transform_7, window_bounds = array<i64: 16, 1>}, {transform_indices = @transform_8, window_bounds = array<i64: 1>}, {transform_indices = @transform_9, window_bounds = array<i64: 1>}, {transform_indices = @transform_10, window_bounds = array<i64: 2, 1>}]} {
    %c0 = arith.constant 0 : index
    %c0_0 = arith.constant 0 : index
    %c0_1 = arith.constant 0 : index
    %0 = vector.load %arg1[%c0, %c0_0, %c0_1] : memref<2x8x32xf32, #tpu.memory_space<vmem>>, vector<2x8x32xf32>
    %c0_2 = arith.constant 0 : index
    %c0_3 = arith.constant 0 : index
    %1 = vector.load %arg2[%c0_2, %c0_3] : memref<1x32xf32, #tpu.memory_space<vmem>>, vector<1x32xf32>
    %2 = vector.shape_cast %1 : vector<1x32xf32> to vector<1x1x32xf32>
    %3 = vector.broadcast %2 : vector<1x1x32xf32> to vector<2x8x32xf32>
    %4 = arith.mulf %0, %3 : vector<2x8x32xf32>
    %cst = arith.constant dense<0.000000e+00> : vector<2x8xf32>
    %5 = vector.multi_reduction <add>, %4, %cst [2] : vector<2x8x32xf32> to vector<2x8xf32>
    %6 = vector.shape_cast %5 : vector<2x8xf32> to vector<2x8x1xf32>
    %cst_4 = arith.constant dense<0xFF800000> : vector<2x1xf32>
    %7 = vector.multi_reduction <maximumf>, %6, %cst_4 [1] : vector<2x8x1xf32> to vector<2x1xf32>
    %8 = vector.shape_cast %7 : vector<2x1xf32> to vector<2x1x1xf32>
    %9 = vector.broadcast %8 : vector<2x1x1xf32> to vector<2x8x1xf32>
    %10 = arith.subf %6, %9 : vector<2x8x1xf32>
    %11 = math.exp %10 : vector<2x8x1xf32>
    %cst_5 = arith.constant dense<0.000000e+00> : vector<2x1xf32>
    %12 = vector.multi_reduction <add>, %11, %cst_5 [1] : vector<2x8x1xf32> to vector<2x1xf32>
    %13 = vector.shape_cast %12 : vector<2x1xf32> to vector<2x1x1xf32>
    %cst_6 = arith.constant 1.000000e+00 : f32
    %14 = vector.broadcast %cst_6 : f32 to vector<2x1x1xf32>
    %15 = arith.divf %14, %13 : vector<2x1x1xf32>
    %16 = vector.broadcast %11 : vector<2x8x1xf32> to vector<2x8x32xf32>
    %17 = arith.mulf %0, %16 : vector<2x8x32xf32>
    %cst_7 = arith.constant dense<0.000000e+00> : vector<2x32xf32>
    %18 = vector.multi_reduction <add>, %17, %cst_7 [1] : vector<2x8x32xf32> to vector<2x32xf32>
    %19 = vector.shape_cast %15 : vector<2x1x1xf32> to vector<2x1xf32>
    %20 = vector.broadcast %19 : vector<2x1xf32> to vector<2x32xf32>
    %21 = arith.mulf %18, %20 : vector<2x32xf32>
    %22 = vector.shape_cast %0 : vector<2x8x32xf32> to vector<16x32xf32>
    %c0_8 = arith.constant 0 : index
    %c0_9 = arith.constant 0 : index
    %23 = vector.load %arg3[%c0_8, %c0_9] : memref<32x8xf32, #tpu.memory_space<vmem>>, vector<32x8xf32>
    %cst_10 = arith.constant dense<0.000000e+00> : vector<16x8xf32>
    %24 = tpu.matmul %22, %23, %cst_10 {dimension_numbers = #tpu.dot_dimension_numbers<[1], [0], [0], [1], [0, 0, 1, 1], [], []>} : vector<16x32xf32>, vector<32x8xf32>, vector<16x8xf32> -> vector<16x8xf32>
    %25 = vector.shape_cast %24 : vector<16x8xf32> to vector<2x8x8xf32>
    %c0_11 = arith.constant 0 : index
    %c0_12 = arith.constant 0 : index
    %26 = vector.load %arg4[%c0_11, %c0_12] : memref<1x8xf32, #tpu.memory_space<vmem>>, vector<1x8xf32>
    %27 = vector.shape_cast %26 : vector<1x8xf32> to vector<1x1x8xf32>
    %28 = vector.broadcast %27 : vector<1x1x8xf32> to vector<2x8x8xf32>
    %29 = arith.addf %25, %28 : vector<2x8x8xf32>
    %cst_13 = arith.constant 0.000000e+00 : f32
    %30 = vector.broadcast %cst_13 : f32 to vector<2x8x8xf32>
    %31 = arith.maximumf %29, %30 : vector<2x8x8xf32>
    %c0_14 = arith.constant 0 : index
    %c0_15 = arith.constant 0 : index
    %32 = vector.load %arg5[%c0_14, %c0_15] : memref<1x8xf32, #tpu.memory_space<vmem>>, vector<1x8xf32>
    %33 = vector.shape_cast %32 : vector<1x8xf32> to vector<1x1x8xf32>
    %34 = vector.broadcast %33 : vector<1x1x8xf32> to vector<2x8x8xf32>
    %35 = arith.mulf %31, %34 : vector<2x8x8xf32>
    %cst_16 = arith.constant dense<0.000000e+00> : vector<2x8xf32>
    %36 = vector.multi_reduction <add>, %35, %cst_16 [2] : vector<2x8x8xf32> to vector<2x8xf32>
    %37 = vector.shape_cast %36 : vector<2x8xf32> to vector<2x8x1xf32>
    %c0_17 = arith.constant 0 : index
    %38 = memref.load %arg10[%c0_17] : memref<1xf32, #tpu.memory_space<smem>>
    %39 = vector.broadcast %38 : f32 to vector<2x8x1xf32>
    %40 = arith.addf %37, %39 : vector<2x8x1xf32>
    %41 = arith.negf %40 : vector<2x8x1xf32>
    %42 = math.exp %41 : vector<2x8x1xf32>
    %cst_18 = arith.constant 1.000000e+00 : f32
    %43 = vector.broadcast %cst_18 : f32 to vector<2x8x1xf32>
    %44 = arith.addf %43, %42 : vector<2x8x1xf32>
    %45 = arith.divf %43, %44 : vector<2x8x1xf32>
    %cst_19 = arith.constant dense<0.000000e+00> : vector<2x1xf32>
    %46 = vector.multi_reduction <add>, %45, %cst_19 [1] : vector<2x8x1xf32> to vector<2x1xf32>
    %cst_20 = arith.constant 8.000000e+00 : f32
    %47 = vector.broadcast %cst_20 : f32 to vector<2x1xf32>
    %48 = arith.divf %46, %47 : vector<2x1xf32>
    %c0_21 = arith.constant 0 : index
    %c0_22 = arith.constant 0 : index
    %49 = vector.load %arg6[%c0_21, %c0_22] : memref<32x16xf32, #tpu.memory_space<vmem>>, vector<32x16xf32>
    %cst_23 = arith.constant dense<0.000000e+00> : vector<2x16xf32>
    %50 = tpu.matmul %21, %49, %cst_23 {dimension_numbers = #tpu.dot_dimension_numbers<[1], [0], [0], [1], [0, 0, 1, 1], [], []>} : vector<2x32xf32>, vector<32x16xf32>, vector<2x16xf32> -> vector<2x16xf32>
    %c0_24 = arith.constant 0 : index
    %c0_25 = arith.constant 0 : index
    %51 = vector.load %arg7[%c0_24, %c0_25] : memref<1x16xf32, #tpu.memory_space<vmem>>, vector<1x16xf32>
    %52 = vector.broadcast %51 : vector<1x16xf32> to vector<2x16xf32>
    %53 = arith.addf %50, %52 : vector<2x16xf32>
    %cst_26 = arith.constant 0.000000e+00 : f32
    %54 = vector.broadcast %cst_26 : f32 to vector<2x16xf32>
    %55 = arith.maximumf %53, %54 : vector<2x16xf32>
    %c0_27 = arith.constant 0 : index
    %c0_28 = arith.constant 0 : index
    %56 = vector.load %arg8[%c0_27, %c0_28] : memref<16x1xf32, #tpu.memory_space<vmem>>, vector<16x1xf32>
    %cst_29 = arith.constant dense<0.000000e+00> : vector<2x1xf32>
    %57 = tpu.matmul %55, %56, %cst_29 {dimension_numbers = #tpu.dot_dimension_numbers<[1], [0], [0], [1], [0, 0, 1, 1], [], []>} : vector<2x16xf32>, vector<16x1xf32>, vector<2x1xf32> -> vector<2x1xf32>
    %c0_30 = arith.constant 0 : index
    %58 = memref.load %arg9[%c0_30] : memref<1xf32, #tpu.memory_space<smem>>
    %59 = vector.broadcast %58 : f32 to vector<2x1xf32>
    %60 = arith.addf %57, %59 : vector<2x1xf32>
    %61 = arith.negf %60 : vector<2x1xf32>
    %62 = math.exp %61 : vector<2x1xf32>
    %cst_31 = arith.constant 1.000000e+00 : f32
    %63 = vector.broadcast %cst_31 : f32 to vector<2x1xf32>
    %64 = arith.addf %63, %62 : vector<2x1xf32>
    %65 = arith.divf %63, %64 : vector<2x1xf32>
    %cst_32 = arith.constant 0.699999988 : f32
    %66 = vector.broadcast %cst_32 : f32 to vector<2x1xf32>
    %67 = arith.mulf %66, %65 : vector<2x1xf32>
    %cst_33 = arith.constant 3.000000e-01 : f32
    %68 = vector.broadcast %cst_33 : f32 to vector<2x1xf32>
    %69 = arith.mulf %68, %48 : vector<2x1xf32>
    %70 = arith.addf %67, %69 : vector<2x1xf32>
    %c0_34 = arith.constant 0 : index
    %c0_35 = arith.constant 0 : index
    %71 = vector.load %arg11[%c0_34, %c0_35] : memref<2x1xf32, #tpu.memory_space<vmem>>, vector<2x1xf32>
    tpu.vector_store %arg11[%c0_34, %c0_35], %70 {strides = array<i32>} : memref<2x1xf32, #tpu.memory_space<vmem>>, vector<2x1xf32>,
    return
  }
  func.func @transform_0(%arg0: i32) -> (i32, i32, i32) {
    %c0_i32 = arith.constant 0 : i32
    %c0_i32_0 = arith.constant 0 : i32
    %c0_i32_1 = arith.constant 0 : i32
    return %arg0, %c0_i32, %c0_i32_0 : i32, i32, i32
  }
  func.func @transform_1(%arg0: i32) -> (i32, i32) {
    %c0_i32 = arith.constant 0 : i32
    %c0_i32_0 = arith.constant 0 : i32
    %c0_i32_1 = arith.constant 0 : i32
    return %c0_i32, %c0_i32_0 : i32, i32
  }
  func.func @transform_2(%arg0: i32) -> (i32, i32) {
    %c0_i32 = arith.constant 0 : i32
    %c0_i32_0 = arith.constant 0 : i32
    %c0_i32_1 = arith.constant 0 : i32
    return %c0_i32, %c0_i32_0 : i32, i32
  }
  func.func @transform_3(%arg0: i32) -> (i32, i32) {
    %c0_i32 = arith.constant 0 : i32
    %c0_i32_0 = arith.constant 0 : i32
    %c0_i32_1 = arith.constant 0 : i32
    return %c0_i32, %c0_i32_0 : i32, i32
  }
  func.func @transform_4(%arg0: i32) -> (i32, i32) {
    %c0_i32 = arith.constant 0 : i32
    %c0_i32_0 = arith.constant 0 : i32
    %c0_i32_1 = arith.constant 0 : i32
    return %c0_i32, %c0_i32_0 : i32, i32
  }
  func.func @transform_5(%arg0: i32) -> (i32, i32) {
    %c0_i32 = arith.constant 0 : i32
    %c0_i32_0 = arith.constant 0 : i32
    %c0_i32_1 = arith.constant 0 : i32
    return %c0_i32, %c0_i32_0 : i32, i32
  }
  func.func @transform_6(%arg0: i32) -> (i32, i32) {
    %c0_i32 = arith.constant 0 : i32
    %c0_i32_0 = arith.constant 0 : i32
    %c0_i32_1 = arith.constant 0 : i32
    return %c0_i32, %c0_i32_0 : i32, i32
  }
  func.func @transform_7(%arg0: i32) -> (i32, i32) {
    %c0_i32 = arith.constant 0 : i32
    %c0_i32_0 = arith.constant 0 : i32
    %c0_i32_1 = arith.constant 0 : i32
    return %c0_i32, %c0_i32_0 : i32, i32
  }
  func.func @transform_8(%arg0: i32) -> i32 {
    %c0_i32 = arith.constant 0 : i32
    %c0_i32_0 = arith.constant 0 : i32
    return %c0_i32 : i32
  }
  func.func @transform_9(%arg0: i32) -> i32 {
    %c0_i32 = arith.constant 0 : i32
    %c0_i32_0 = arith.constant 0 : i32
    return %c0_i32 : i32
  }
  func.func @transform_10(%arg0: i32) -> (i32, i32) {
    %c0_i32 = arith.constant 0 : i32
    %c0_i32_0 = arith.constant 0 : i32
    return %arg0, %c0_i32 : i32, i32
  }
}

</mosaic_0001>

<bundles_post_ra>
// kernel: tpu_custom_call.1
= control target key start
LH: loop header
LB: loop body
LE: loop exit
PB: predicated region body
PF: predicated region fallthrough
CT: control target
= control target key end

     0   :  { %vm48_vm0 = vcmask 261120   ;;  %v512_v7 = vmov 0.0   ;;  %vm513_vm1 = vmmov 0   ;;  %vm263_vm2 = vcmask 1041409   ;;  %s655_s0 = inlined_call_operand.vmem [shape: f32[2,8,32], index: 0, kind: input, shape index: {}]   ;;  %s656_s1 = inlined_call_operand.vmem [shape: f32[1,32], index: 1, kind: input, shape index: {}]   ;;  %s657_s5 = inlined_call_operand.vmem [shape: f32[32,16], index: 5, kind: input, shape index: {}]   ;;  %s658_s2 = inlined_call_operand.vmem [shape: f32[32,8], index: 2, kind: input, shape index: {}]   ;;  %s659_s7 = inlined_call_operand.vmem [shape: f32[16,1], index: 7, kind: input, shape index: {}]   ;;  %s660_s3 = inlined_call_operand.vmem [shape: f32[1,8], index: 3, kind: input, shape index: {}]   ;;  %s661_s4 = inlined_call_operand.vmem [shape: f32[1,8], index: 4, kind: input, shape index: {}]   ;;  %s662_s6 = inlined_call_operand.vmem [shape: f32[1,16], index: 6, kind: input, shape index: {}]   ;;  %s663_s9 = inlined_call_operand.<no memory space> [shape: f32[1], index: 9, kind: input, shape index: {}]   ;;  %s664_s8 = inlined_call_operand.<no memory space> [shape: f32[1], index: 8, kind: input, shape index: {}]   ;;  %s665_s10 = inlined_call_operand.vmem [shape: f32[2,1], index: 10, kind: output, shape index: {}]  }
   0x1   :  { %v572_v0 = vld [vmem:[%s655_s0] sm:$0xff]  ;;  %v580_v2 = vld [vmem:[%s655_s0 + $0x8] sm:$0xff]  ;;  %472 = vmatprep.subr.mxu1 %v512_v7  ;;  %v253_v8 = vld [vmem:[%s657_s5 + $0x18] sm:$0xff]  ;;  %480 = vmatprep.mubr.msk.f32.mxu1 %vm513_vm1, %v512_v7  ;;  %vm212_vm3 = vcmask 64512   ;;  %vm342_vm4 = vcmask 130048   ;;  %vm430_vm5 = vcmask 1024  }
   0x2   :  { %v436_v1 = vld [vmem:[%s656_s1] ss:$0 sm:$0xff]  ;;  %469 = vmatprep.mubr.msk.f32.mxu0 %vm48_vm0, %v572_v0  ;;  %v252_v9 = vld [vmem:[%s657_s5 + $0x10] sm:$0xff]  ;;  %473 = vmatpush3.msra.mxu1 %v253_v8  ;;  %v251_v10 = vld [vmem:[%s657_s5 + $0x8] sm:$0xff] }
   0x3   :  { %v46_v3 = vmul.f32 %v436_v1, %v572_v0  ;;  %v47_v4 = vmul.f32 %v436_v1, %v580_v2  ;;  %474 = vmatprep.subr.mxu1 %v512_v7  ;;  %v250_v11 = vld [vmem:[%s657_s5] sm:$0xff]  ;;  %v110_v12 = vld [vmem:[%s658_s2 + $0x18] sm:$0xff]  ;;  %v109_v13 = vld [vmem:[%s658_s2 + $0x10] sm:$0xff] }
   0x4   :  { %475 = vmatpush3.msra.mxu1 %v252_v9  ;;  %461 = vmatprep.subr.mxu0 %v110_v12  ;;  %v108_v14 = vld [vmem:[%s658_s2 + $0x8] sm:$0xff]  ;;  %v107_v15 = vld [vmem:[%s658_s2] sm:$0xff] }
   0x5   :  { %v49_v5 = vsel %vm48_vm0, %v46_v3, 0.0  ;;  %v52_v6 = vsel %vm48_vm0, %v47_v4, 0.0  ;;  %476 = vmatprep.subr.mxu1 %v512_v7  ;;  %462 = vmatpush3.msra.mxu0 %v110_v12  ;;  %v439_v9 = vld [vmem:[%s660_s3] ss:$0 sm:$0xff] }
   0x6   :  { %50 = vadd.xlane.f32.xlu0 %v49_v5  ;;  %477 = vmatpush3.msra.mxu1 %v251_v10  ;;  %v339_v5 = vld [vmem:[%s659_s7 + $0x8] sm:$0xff] }
   0x7   :  { %478 = vmatprep.subr.mxu1 %v512_v7  ;;  %463 = vmatprep.subr.mxu0 %v109_v13 }
   0x8   :  { %479 = vmatpush3.msra.mxu1 %v250_v11  ;;  %464 = vmatpush3.msra.mxu0 %v109_v13 }
   0x9   :  { %465 = vmatprep.subr.mxu0 %v108_v14 }
   0xa   :  { %53 = vadd.xlane.f32.xlu0 %v52_v6  ;;  %466 = vmatpush3.msra.mxu0 %v108_v14  ;;  %v338_v6 = vld [vmem:[%s659_s7] sm:$0xff] }
   0xb   :  { %467 = vmatprep.subr.mxu0 %v107_v15  ;;  %v440_v14 = vld [vmem:[%s661_s4] ss:$0 sm:$0xff] }
   0xc   :  { %468 = vmatpush3.msra.mxu0 %v107_v15 }
   0xd   :  { %470 = vmatmul.mubr.msk.f32.vlgmr.msra.gmra.mxu0 %vm48_vm0, %v580_v2  ;;  %483 = vmatprep.subr.mxu0 %v512_v7 }
   0xe   :  { %487 = vmatprep.mubr.msk.f32.mxu0 %vm513_vm1, %v512_v7  ;;  %484 = vmatpush3.msra.mxu0 %v339_v5 }
   0xf   :  { %485 = vmatprep.subr.mxu0 %v512_v7 }
  0x10   :  { %486 = vmatpush3.msra.mxu0 %v338_v6 }
  0x8f   :  { %v51_v16 = vpop.xlane.xlu0 %50 }
  0x90   :  { %v55_v17 = vrot.slane %v51_v16, 4 }
  0x92   :  { %v56_v18 = vmax.f32 %v51_v16, %v55_v17 }
  0x93   :  { %v54_v19 = vpop.xlane.xlu0 %53 }
  0x94   :  { %v57_v20 = vrot.slane %v56_v18, 2  ;;  %v61_v21 = vrot.slane %v54_v19, 4 }
  0x96   :  { %v58_v22 = vmax.f32 %v56_v18, %v57_v20  ;;  %v62_v23 = vmax.f32 %v54_v19, %v61_v21 }
  0x98   :  { %v59_v24 = vrot.slane %v58_v22, 1  ;;  %v63_v25 = vrot.slane %v62_v23, 2 }
  0x9a   :  { %v60_v26 = vmax.f32 %v58_v22, %v59_v24  ;;  %v64_v27 = vmax.f32 %v62_v23, %v63_v25  ;;  %v220_v25 = vstv %s663_s9 }
  0x9c   :  { %v67_v28 = vsub.f32 %v51_v16, %v60_v26  ;;  %v65_v29 = vrot.slane %v64_v27, 1 }
  0x9e   :  { %v69_v30 = vmul.f32 1.442695, %v67_v28  ;;  %v66_v31 = vmax.f32 %v64_v27, %v65_v29 }
  0xa0   :  { %492 = vpow2.f32 %v69_v30  ;;  %v68_v32 = vsub.f32 %v54_v19, %v66_v31  ;;  %v443_v19 = vld [vmem:[%s662_s6] ss:$0 sm:$0xff] }
  0xa2   :  { %v71_v33 = vmul.f32 1.442695, %v68_v32 }
  0xa4   :  { %494 = vpow2.f32 %v71_v33 }
  0xad   :  { %v493_v34 = vpop.eup %492 }
  0xae   :  { %v73_v35 = vrot.slane %v493_v34, 4  ;;  %v89_v36 = vmul.f32 %v493_v34, %v572_v0 }
  0xb0   :  { %v74_v37 = vadd.f32 %v493_v34, %v73_v35  ;;  %v91_v42 = vsel %vm48_vm0, %v89_v36, 0.0  ;;  %v341_v35 = vstv %s664_s8 }
  0xb1   :  { %v495_v38 = vpop.eup %494  ;;  %v92_v48 = vrot.slane %v91_v42, 4 }
  0xb2   :  { %v75_v39 = vrot.slane %v74_v37, 2  ;;  %v79_v40 = vrot.slane %v495_v38, 4  ;;  %v90_v41 = vmul.f32 %v495_v38, %v580_v2 }
  0xb3   :  { %v93_v53 = vadd.f32 %v92_v48, %v91_v42 }
  0xb4   :  { %v76_v43 = vadd.f32 %v75_v39, %v74_v37  ;;  %v80_v44 = vadd.f32 %v495_v38, %v79_v40  ;;  %v98_v45 = vsel %vm48_vm0, %v90_v41, 0.0 }
  0xb5   :  { %v99_v49 = vrot.slane %v98_v45, 4  ;;  %v94_v56 = vrot.slane %v93_v53, 2 }
  0xb6   :  { %v77_v46 = vrot.slane %v76_v43, 1  ;;  %v81_v47 = vrot.slane %v80_v44, 2 }
  0xb7   :  { %v100_v54 = vadd.f32 %v99_v49, %v98_v45  ;;  %v95_v58 = vadd.f32 %v94_v56, %v93_v53 }
  0xb8   :  { %v78_v50 = vadd.f32 %v77_v46, %v76_v43  ;;  %v82_v51 = vadd.f32 %v81_v47, %v80_v44 }
  0xb9   :  { %v101_v57 = vrot.slane %v100_v54, 2  ;;  %v96_v60 = vrot.slane %v95_v58, 1 }
  0xba   :  { %v83_v52 = vrot.slane %v82_v51, 1  ;;  %496 = vrcp.f32 %v78_v50 }
  0xbb   :  { %v102_v59 = vadd.f32 %v101_v57, %v100_v54  ;;  %v97_v63 = vadd.f32 %v96_v60, %v95_v58 }
  0xbc   :  { %v84_v55 = vadd.f32 %v83_v52, %v82_v51 }
  0xbd   :  { %v103_v61 = vrot.slane %v102_v59, 1 }
  0xbe   :  { %498 = vrcp.f32 %v84_v55 }
  0xbf   :  { %v104_v0 = vadd.f32 %v103_v61, %v102_v59 }
  0xc7   :  { %v497_v62 = vpop.eup %496 }
  0xc8   :  { %v105_v2 = vmul.f32 %v497_v62, %v97_v63 }
  0xcb   :  { %v499_v1 = vpop.eup %498 }
  0xcc   :  { %v106_v3 = vmul.f32 %v499_v1, %v104_v0 }
  0xcd   :  { %v471_v8 = vpop.f32.mrf.mxu0 }
  0xce   :  { %v264_v4 = vsel %vm263_vm2, %v106_v3, %v105_v2  ;;  %v200_v10 = vadd.f32 %v471_v8, %v439_v9 }
  0xcf   :  { %481 = vmatmul.mubr.msk.f32.vlgmr.msra.gmra.mxu1 %vm48_vm0, %v264_v4  ;;  %v183_v11 = vpop.f32.mrf.mxu0 }
  0xd0   :  { %v202_v12 = vmax.f32 %v200_v10, 0.0  ;;  %v199_v13 = vadd.f32 %v439_v9, %v183_v11 }
  0xd2   :  { %v201_v15 = vmax.f32 %v199_v13, 0.0  ;;  %v211_v16 = vmul.f32 %v440_v14, %v202_v12 }
  0xd4   :  { %v210_v7 = vmul.f32 %v440_v14, %v201_v15  ;;  %v216_v18 = vsel %vm212_vm3, %v211_v16, 0.0 }
  0xd6   :  { %v213_v17 = vsel %vm212_vm3, %v210_v7, 0.0 }
  0xd7   :  { %214 = vadd.xlane.f32.xlu1 %v213_v17 }
  0xdb   :  { %217 = vadd.xlane.f32.xlu1 %v216_v18 }
 0x160   :  { %v215_v24 = vpop.xlane.xlu1 %214 }
 0x161   :  { %v221_v27 = vadd.f32 %v220_v25, %v215_v24 }
 0x163   :  { %v441_v29 = vmul.f32 -1.442695, %v221_v27 }
 0x164   :  { %v218_v26 = vpop.xlane.xlu1 %217 }
 0x165   :  { %v222_v28 = vadd.f32 %v220_v25, %v218_v26  ;;  %500 = vpow2.f32 %v441_v29 }
 0x167   :  { %v442_v30 = vmul.f32 -1.442695, %v222_v28 }
 0x169   :  { %502 = vpow2.f32 %v442_v30 }
 0x172   :  { %v501_v31 = vpop.eup %500 }
 0x173   :  { %v229_v33 = vadd.f32 1.0, %v501_v31 }
 0x175   :  { %504 = vrcp.f32 %v229_v33 }
 0x176   :  { %v503_v32 = vpop.eup %502 }
 0x177   :  { %v230_v34 = vadd.f32 1.0, %v503_v32 }
 0x179   :  { %506 = vrcp.f32 %v230_v34 }
 0x182   :  { %v505_v36 = vpop.eup %504 }
 0x183   :  { %v235_v42 = vrot.slane %v505_v36, 4 }
 0x185   :  { %v236_v44 = vadd.f32 %v505_v36, %v235_v42 }
 0x186   :  { %v507_v38 = vpop.eup %506 }
 0x187   :  { %v241_v43 = vrot.slane %v507_v38, 4  ;;  %v237_v46 = vrot.slane %v236_v44, 2 }
 0x189   :  { %v242_v45 = vadd.f32 %v507_v38, %v241_v43  ;;  %v238_v48 = vadd.f32 %v237_v46, %v236_v44 }
 0x18b   :  { %v243_v47 = vrot.slane %v242_v45, 2  ;;  %v239_v52 = vrot.slane %v238_v48, 1 }
 0x18d   :  { %v244_v49 = vadd.f32 %v243_v47, %v242_v45  ;;  %v240_v54 = vadd.f32 %v239_v52, %v238_v48 }
 0x18f   :  { %v333_v20 = vpop.f32.mrf.mxu1  ;;  %v245_v53 = vrot.slane %v244_v49, 1  ;;  %v248_v56 = vmul.f32 0.125, %v240_v54 }
 0x190   :  { %v334_v21 = vadd.f32 %v443_v19, %v333_v20 }
 0x191   :  { %v482_v22 = vpop.f32.mrf.mxu1  ;;  %v246_v55 = vadd.f32 %v245_v53, %v244_v49  ;;  %v423_v58 = vmul.f32 0.3, %v248_v56 }
 0x192   :  { %v337_v23 = vmax.f32 %v334_v21, 0.0 }
 0x193   :  { %v249_v57 = vmul.f32 0.125, %v246_v55 }
 0x194   :  { %488 = vmatmul.mubr.msk.f32.vlgmr.msra.gmra.mxu0 %vm342_vm4, %v337_v23 }
 0x195   :  { %v424_v59 = vmul.f32 0.3, %v249_v57 }
 0x197   :  { %v427_v62 = vsel %vm263_vm2, %v424_v59, %v423_v58 }
 0x254   :  { %v412_v37 = vpop.f32.mrf.mxu0 }
 0x255   :  { %v413_v39 = vadd.f32 %v412_v37, %v341_v35 }
 0x256   :  { %v489_v40 = vpop.f32.mrf.mxu0 }
 0x257   :  { %v446_v41 = vmul.f32 -1.442695, %v413_v39 }
 0x259   :  { %508 = vpow2.f32 %v446_v41 }
 0x266   :  { %v509_v50 = vpop.eup %508 }
 0x267   :  { %v419_v51 = vadd.f32 1.0, %v509_v50 }
 0x269   :  { %510 = vrcp.f32 %v419_v51 }
 0x276   :  { %v511_v60 = vpop.eup %510 }
 0x277   :  { %v422_v61 = vmul.f32 0.7, %v511_v60 }
 0x279   :  { %v429_v63 = vadd.f32 %v427_v62, %v422_v61 }
 0x27b   :  { %431 = vst.msk [vmem:[%s665_s10] sm:$0x3] %vm430_vm5, %v429_v63 }

</bundles_post_ra>
